<compile_context>
chip_gen: v7x
topology: tpu7x:2x2x1
jax: 0.10.0
libtpu: 0.0.40
codegen_flags: <defaults>
</compile_context>

<pallas_src>
import functools

import jax
import jax.numpy as jnp
import numpy as np
from jax.experimental import pallas as pl
from jax.experimental.pallas import tpu as pltpu


# MXU operand dtype for the large matmuls (accumulation is always f32).  Set to
# jnp.bfloat16 on v6e/v7x for ~2x MXU throughput at large C; kept at f32 here so
# the self-test stays tight against the f32 reference (loosen tol if switched).
MATMUL_DTYPE = jnp.float32


def _pick_tile(total, target):
    """Largest tile <= target that divides `total` and is lane-aligned."""
    if total <= target:
        return total
    t = (target // 128) * 128
    while t >= 128:
        if total % t == 0:
            return t
        t -= 128
    return total


def _scoped_vmem(block_bytes):
    """Explicit VMEM budget: double-buffered blocks + headroom, clamped so the
    value is valid on v5e/v6e (128 MiB) and v7x (64 MiB physical)."""
    return int(min(max(4 * block_bytes + (8 << 20), 32 << 20), 60 << 20))


# ---------------------------------------------------------------------------
# Kernel A: per-image statistics.
#   fused phi/g projections + 2x2 max-pool + A = g_s @ phi_s^T / Ns, then fold
#   W / BN / theta weights into a per-image affine (W_eff, b_eff).
# ---------------------------------------------------------------------------
def _stats_kernel(xw_ref, wpg_ref, bpg_ref,
                  wWf_ref, wt_ref, bt_ref, bf_ref,
                  weff_ref, beff_ref, acc_ref, *, n_win, n_inter, inv_ns):
    # xw_ref : (1, n_win, C, TS)  window-offset views of x for TS pooled positions
    # wpg    : (2*Ci, C)   stacked [w_phi; w_g]     bpg : (2*Ci, 1)
    # wWf    : (C, Ci)     BN-scale-folded w_W
    # wt     : (Ci, C)     bt : (1, Ci)     bf : (C, 1)  folded (b_W*scale + shift)
    # weff   : (1, C, C) out,  beff : (1, C, 1) out,  acc : (Ci, Ci) f32 scratch
    t = pl.program_id(1)

    @pl.when(t == 0)
    def _init():
        acc_ref[...] = jnp.zeros_like(acc_ref)

    # One projection chain for phi and g together; max over the s*s window
    # offsets == 2x2 max-pool of the 1x1-conv output (bias commutes with max).
    wpg = wpg_ref[...].astype(MATMUL_DTYPE)                        # (2Ci, C)
    best = jnp.dot(wpg, xw_ref[0, 0].astype(MATMUL_DTYPE),
                   preferred_element_type=jnp.float32)             # (2Ci, TS)
    for q in range(1, n_win):
        best = jnp.maximum(
            best,
            jnp.dot(wpg, xw_ref[0, q].astype(MATMUL_DTYPE),
                    preferred_element_type=jnp.float32))
    pooled = best + bpg_ref[...]                                   # (2Ci, TS)
    phi_p = pooled[:n_inter]                                       # (Ci, TS)
    g_p = pooled[n_inter:]                                         # (Ci, TS)

    # A += g_s @ phi_s^T   (contract over the pooled spatial positions)
    acc_ref[...] += jax.lax.dot_general(
        g_p, phi_p, (((1,), (1,)), ((), ())),
        preferred_element_type=jnp.float32)

    @pl.when(t == pl.num_programs(1) - 1)
    def _finalize():
        a = acc_ref[...] * inv_ns                                          # (Ci, Ci)
        m = jnp.dot(wWf_ref[...], a, preferred_element_type=jnp.float32)   # (C, Ci)
        weff_ref[0] = jnp.dot(m, wt_ref[...],
                              preferred_element_type=jnp.float32)          # (C, C)
        beff_ref[0] = (jnp.sum(m * bt_ref[...], axis=1, keepdims=True)
                       + bf_ref[...])                                      # (C, 1)


# ---------------------------------------------------------------------------
# Kernel B: fused output.
#   out = W_eff @ x + b_eff + x   (attention + W conv + BN + residual, folded)
# ---------------------------------------------------------------------------
def _out_kernel(x_ref, weff_ref, beff_ref, o_ref):
    xb = x_ref[0]                                                          # (C, TN)
    y = jnp.dot(weff_ref[0].astype(MATMUL_DTYPE), xb.astype(MATMUL_DTYPE),
                preferred_element_type=jnp.float32)
    o_ref[0] = (y + beff_ref[0] + xb).astype(o_ref.dtype)


# ---------------------------------------------------------------------------
# Wrapper
# ---------------------------------------------------------------------------
def nonlocal_block_forward(x_nchw, params, downsample_stride=2, eps=1e-5):
    B, C, H, W = x_nchw.shape
    Ci = params["w_theta"].shape[0]
    s = downsample_stride
    assert H % s == 0 and W % s == 0
    Hs, Ws = H // s, W // s
    N, Ns = H * W, Hs * Ws
    Q = s * s

    # Channels-first flat view (free; no transpose).
    x_cn = x_nchw.reshape(B, C, N)

    # Window-offset views of x for the pooled positions: (B, s*s, C, Ns).
    # (one XLA transpose of x; keeps the kernels free of in-kernel reshapes)
    xw = x_nchw.reshape(B, C, Hs, s, Ws, s)
    xw = jnp.transpose(xw, (0, 3, 5, 1, 2, 4)).reshape(B, Q, C, Ns)

    # Fold eval-mode BatchNorm into the W conv.
    # TODO(synk): training-mode BN (batch-statistics update) is not implemented;
    # this uses running stats (inference), matching module.eval().
    scale = params["bn_gamma"] / jnp.sqrt(params["bn_var"] + eps)          # (C,)
    shift = params["bn_beta"] - params["bn_mean"] * scale                  # (C,)
    wW_fold = params["w_W"] * scale[:, None]                               # (C, Ci)
    b_fold = (params["b_W"] * scale + shift)[:, None]                      # (C, 1)

    # Stack phi/g projection weights so Kernel A does one matmul per offset.
    wpg = jnp.concatenate([params["w_phi"], params["w_g"]], axis=0)        # (2Ci, C)
    bpg = jnp.concatenate([params["b_phi"], params["b_g"]], axis=0)[:, None]
    bt_row = params["b_theta"][None, :]                                    # (1, Ci)

    # ---- Kernel A: per-image (W_eff, b_eff) --------------------------------
    TS = _pick_tile(Ns, 2048)
    nA = Ns // TS
    vmem_a = _scoped_vmem(
        4 * (Q * C * TS + 3 * Ci * C + C * Ci + C * C + 4 * C + 4 * Ci))

    weff, beff = pl.pallas_call(
        functools.partial(_stats_kernel, n_win=Q, n_inter=Ci, inv_ns=1.0 / Ns),
        out_shape=(jax.ShapeDtypeStruct((B, C, C), jnp.float32),
                   jax.ShapeDtypeStruct((B, C, 1), jnp.float32)),
        grid=(B, nA),
        in_specs=[
            pl.BlockSpec((1, Q, C, TS), lambda b, t: (b, 0, 0, t)),   # x windows
            pl.BlockSpec((2 * Ci, C), lambda b, t: (0, 0)),           # [w_phi;w_g]
            pl.BlockSpec((2 * Ci, 1), lambda b, t: (0, 0)),           # [b_phi;b_g]
            pl.BlockSpec((C, Ci), lambda b, t: (0, 0)),               # w_W * scale
            pl.BlockSpec((Ci, C), lambda b, t: (0, 0)),               # w_theta
            pl.BlockSpec((1, Ci), lambda b, t: (0, 0)),               # b_theta
            pl.BlockSpec((C, 1), lambda b, t: (0, 0)),                # folded bias
        ],
        out_specs=(pl.BlockSpec((1, C, C), lambda b, t: (b, 0, 0)),
                   pl.BlockSpec((1, C, 1), lambda b, t: (b, 0, 0))),
        scratch_shapes=[pltpu.VMEM((Ci, Ci), jnp.float32)],
        compiler_params=pltpu.CompilerParams(
            dimension_semantics=("parallel", "arbitrary"),
            vmem_limit_bytes=vmem_a),
    )(xw, wpg, bpg, wW_fold, params["w_theta"], bt_row, b_fold)

    # ---- Kernel B: out = W_eff @ x + b_eff + x, tiled over N ---------------
    TN = _pick_tile(N, 1024)
    nB = N // TN
    vmem_b = _scoped_vmem(4 * (2 * C * TN + C * C + C))

    out_cn = pl.pallas_call(
        _out_kernel,
        out_shape=jax.ShapeDtypeStruct((B, C, N), jnp.float32),
        grid=(B, nB),
        in_specs=[
            pl.BlockSpec((1, C, TN), lambda b, t: (b, 0, t)),         # x
            pl.BlockSpec((1, C, C), lambda b, t: (b, 0, 0)),          # W_eff
            pl.BlockSpec((1, C, 1), lambda b, t: (b, 0, 0)),          # b_eff
        ],
        out_specs=pl.BlockSpec((1, C, TN), lambda b, t: (b, 0, t)),
        compiler_params=pltpu.CompilerParams(
            dimension_semantics=("parallel", "parallel"),
            vmem_limit_bytes=vmem_b),
    )(x_cn, weff, beff)

    return out_cn.reshape(B, C, H, W)


# ---------------------------------------------------------------------------
# Pure-JAX reference (mirrors the PyTorch forward, no folding / reassociation)
# ---------------------------------------------------------------------------
def reference_forward(x, p, s=2, eps=1e-5):
    B, C, H, W = x.shape
    Ci = p["w_theta"].shape[0]
    xf = x.reshape(B, C, H * W)                                        # (B, C, N)

    def conv1x1(w, b, t):
        return jnp.einsum("oc,bcn->bon", w, t) + b[None, :, None]

    theta = conv1x1(p["w_theta"], p["b_theta"], xf)                    # (B, Ci, N)
    phi = conv1x1(p["w_phi"], p["b_phi"], xf)
    g = conv1x1(p["w_g"], p["b_g"], xf)

    def pool(a):
        a = a.reshape(B, Ci, H // s, s, W // s, s)
        return a.max(axis=(3, 5)).reshape(B, Ci, -1)                   # (B, Ci, Ns)

    phi_s, g_s = pool(phi), pool(g)
    theta_x = jnp.swapaxes(theta, 1, 2)                                # (B, N, Ci)
    g_x = jnp.swapaxes(g_s, 1, 2)                                      # (B, Ns, Ci)
    f = jnp.einsum("bnc,bcm->bnm", theta_x, phi_s) / phi_s.shape[-1]   # (B, N, Ns)
    y = jnp.einsum("bnm,bmc->bnc", f, g_x)                             # (B, N, Ci)
    y_cn = jnp.swapaxes(y, 1, 2)                                       # (B, Ci, N)
    wy = jnp.einsum("oc,bcn->bon", p["w_W"], y_cn) + p["b_W"][None, :, None]
    scale = p["bn_gamma"] / jnp.sqrt(p["bn_var"] + eps)
    shift = p["bn_beta"] - p["bn_mean"] * scale
    z = wy * scale[None, :, None] + shift[None, :, None] + xf
    return z.reshape(B, C, H, W)


if __name__ == "__main__":
    B, C, H, W = 2, 4, 16, 16
    Ci = max(C // 2, 1)

    key = jax.random.PRNGKey(0)
    ks = jax.random.split(key, 13)
    x = jax.random.normal(ks[0], (B, C, H, W), jnp.float32)

    # Conv weights are stored PyTorch-style: (out_channels, in_channels).
    # NOTE: the PyTorch module initializes BN gamma/beta to 0 (output == residual);
    # the test uses non-trivial BN parameters so the full theta/phi/g/attention/W
    # path is actually validated.
    params = dict(
        w_theta=0.2 * jax.random.normal(ks[1], (Ci, C), jnp.float32),
        b_theta=0.1 * jax.random.normal(ks[2], (Ci,), jnp.float32),
        w_phi=0.2 * jax.random.normal(ks[3], (Ci, C), jnp.float32),
        b_phi=0.1 * jax.random.normal(ks[4], (Ci,), jnp.float32),
        w_g=0.2 * jax.random.normal(ks[5], (Ci, C), jnp.float32),
        b_g=0.1 * jax.random.normal(ks[6], (Ci,), jnp.float32),
        w_W=0.2 * jax.random.normal(ks[7], (C, Ci), jnp.float32),
        b_W=0.1 * jax.random.normal(ks[8], (C,), jnp.float32),
        bn_gamma=1.0 + 0.1 * jax.random.normal(ks[9], (C,), jnp.float32),
        bn_beta=0.1 * jax.random.normal(ks[10], (C,), jnp.float32),
        bn_mean=0.1 * jax.random.normal(ks[11], (C,), jnp.float32),
        bn_var=1.0 + 0.1 * jnp.abs(jax.random.normal(ks[12], (C,), jnp.float32)),
    )

    fwd = jax.jit(nonlocal_block_forward)
    out = jax.block_until_ready(fwd(x, params))

    ref = reference_forward(x, params)
    assert out.shape == (B, C, H, W)
    assert np.allclose(np.asarray(out), np.asarray(ref), atol=1e-4, rtol=1e-4)
    print("KERNEL_OK")
</pallas_src>

<mosaic_0001>
module attributes {stable_mosaic.version = 11 : i64} {
  func.func @_out_kernel(%arg0: i32, %arg1: i32, %arg2: memref<1x4x256xf32, #tpu.memory_space<vmem>>, %arg3: memref<1x4x4xf32, #tpu.memory_space<vmem>>, %arg4: memref<1x4x1xf32, #tpu.memory_space<vmem>>, %arg5: memref<1x4x256xf32, #tpu.memory_space<vmem>>) attributes {dimension_semantics = [#tpu.dimension_semantics<parallel>, #tpu.dimension_semantics<parallel>], iteration_bounds = array<i64: 2, 1>, scalar_prefetch = 0 : i64, scratch_operands = 0 : i64, tpu.core_type = #tpu.core_type<tc>, window_params = [{transform_indices = @transform_0, window_bounds = array<i64: 1, 4, 256>}, {transform_indices = @transform_1, window_bounds = array<i64: 1, 4, 4>}, {transform_indices = @transform_2, window_bounds = array<i64: 1, 4, 1>}, {transform_indices = @transform_3, window_bounds = array<i64: 1, 4, 256>}]} {
    %c0 = arith.constant 0 : index
    %c0_0 = arith.constant 0 : index
    %c0_1 = arith.constant 0 : index
    %0 = vector.load %arg2[%c0, %c0_0, %c0_1] : memref<1x4x256xf32, #tpu.memory_space<vmem>>, vector<1x4x256xf32>
    %1 = vector.shape_cast %0 : vector<1x4x256xf32> to vector<4x256xf32>
    %c0_2 = arith.constant 0 : index
    %c0_3 = arith.constant 0 : index
    %c0_4 = arith.constant 0 : index
    %2 = vector.load %arg3[%c0_2, %c0_3, %c0_4] : memref<1x4x4xf32, #tpu.memory_space<vmem>>, vector<1x4x4xf32>
    %3 = vector.shape_cast %2 : vector<1x4x4xf32> to vector<4x4xf32>
    %cst = arith.constant dense<0.000000e+00> : vector<4x256xf32>
    %4 = tpu.matmul %3, %1, %cst {dimension_numbers = #tpu.dot_dimension_numbers<[1], [0], [0], [1], [0, 0, 1, 1], [], []>} : vector<4x4xf32>, vector<4x256xf32>, vector<4x256xf32> -> vector<4x256xf32>
    %c0_5 = arith.constant 0 : index
    %c0_6 = arith.constant 0 : index
    %c0_7 = arith.constant 0 : index
    %5 = vector.load %arg4[%c0_5, %c0_6, %c0_7] : memref<1x4x1xf32, #tpu.memory_space<vmem>>, vector<1x4x1xf32>
    %6 = vector.shape_cast %5 : vector<1x4x1xf32> to vector<4x1xf32>
    %7 = vector.broadcast %6 : vector<4x1xf32> to vector<4x256xf32>
    %8 = arith.addf %4, %7 : vector<4x256xf32>
    %9 = arith.addf %8, %1 : vector<4x256xf32>
    %c0_8 = arith.constant 0 : index
    %c0_9 = arith.constant 0 : index
    %c0_10 = arith.constant 0 : index
    %10 = vector.load %arg5[%c0_8, %c0_9, %c0_10] : memref<1x4x256xf32, #tpu.memory_space<vmem>>, vector<1x4x256xf32>
    %11 = vector.shape_cast %10 : vector<1x4x256xf32> to vector<4x256xf32>
    %12 = vector.shape_cast %9 : vector<4x256xf32> to vector<1x4x256xf32>
    tpu.vector_store %arg5[%c0_8, %c0_9, %c0_10], %12 {strides = array<i32>} : memref<1x4x256xf32, #tpu.memory_space<vmem>>, vector<1x4x256xf32>,
    return
  }
  func.func @transform_0(%arg0: i32, %arg1: i32) -> (i32, i32, i32) {
    %c0_i32 = arith.constant 0 : i32
    %c0_i32_0 = arith.constant 0 : i32
    return %arg0, %c0_i32, %arg1 : i32, i32, i32
  }
  func.func @transform_1(%arg0: i32, %arg1: i32) -> (i32, i32, i32) {
    %c0_i32 = arith.constant 0 : i32
    %c0_i32_0 = arith.constant 0 : i32
    %c0_i32_1 = arith.constant 0 : i32
    return %arg0, %c0_i32, %c0_i32_0 : i32, i32, i32
  }
  func.func @transform_2(%arg0: i32, %arg1: i32) -> (i32, i32, i32) {
    %c0_i32 = arith.constant 0 : i32
    %c0_i32_0 = arith.constant 0 : i32
    %c0_i32_1 = arith.constant 0 : i32
    return %arg0, %c0_i32, %c0_i32_0 : i32, i32, i32
  }
  func.func @transform_3(%arg0: i32, %arg1: i32) -> (i32, i32, i32) {
    %c0_i32 = arith.constant 0 : i32
    %c0_i32_0 = arith.constant 0 : i32
    return %arg0, %c0_i32, %arg1 : i32, i32, i32
  }
}

module attributes {stable_mosaic.version = 11 : i64} {
  func.func @_stats_kernel(%arg0: i32, %arg1: i32, %arg2: memref<1x4x4x64xf32, #tpu.memory_space<vmem>>, %arg3: memref<4x4xf32, #tpu.memory_space<vmem>>, %arg4: memref<4x1xf32, #tpu.memory_space<vmem>>, %arg5: memref<4x2xf32, #tpu.memory_space<vmem>>, %arg6: memref<2x4xf32, #tpu.memory_space<vmem>>, %arg7: memref<1x2xf32, #tpu.memory_space<vmem>>, %arg8: memref<4x1xf32, #tpu.memory_space<vmem>>, %arg9: memref<1x4x4xf32, #tpu.memory_space<vmem>>, %arg10: memref<1x4x1xf32, #tpu.memory_space<vmem>>, %arg11: memref<2x2xf32, #tpu.memory_space<vmem>>) attributes {dimension_semantics = [#tpu.dimension_semantics<parallel>, #tpu.dimension_semantics<arbitrary>], iteration_bounds = array<i64: 2, 1>, scalar_prefetch = 0 : i64, scratch_operands = 1 : i64, tpu.core_type = #tpu.core_type<tc>, window_params = [{transform_indices = @transform_0, window_bounds = array<i64: 1, 4, 4, 64>}, {pipeline_mode = #tpu.pipeline_mode<synchronous>, transform_indices = @transform_1, window_bounds = array<i64: 4, 4>}, {pipeline_mode = #tpu.pipeline_mode<synchronous>, transform_indices = @transform_2, window_bounds = array<i64: 4, 1>}, {pipeline_mode = #tpu.pipeline_mode<synchronous>, transform_indices = @transform_3, window_bounds = array<i64: 4, 2>}, {pipeline_mode = #tpu.pipeline_mode<synchronous>, transform_indices = @transform_4, window_bounds = array<i64: 2, 4>}, {pipeline_mode = #tpu.pipeline_mode<synchronous>, transform_indices = @transform_5, window_bounds = array<i64: 1, 2>}, {pipeline_mode = #tpu.pipeline_mode<synchronous>, transform_indices = @transform_6, window_bounds = array<i64: 4, 1>}, {transform_indices = @transform_7, window_bounds = array<i64: 1, 4, 4>}, {transform_indices = @transform_8, window_bounds = array<i64: 1, 4, 1>}]} {
    %c0_i32 = arith.constant 0 : i32
    %0 = arith.cmpi eq, %arg1, %c0_i32 : i32
    %1 = arith.extui %0 : i1 to i32
    %c0_i32_0 = arith.constant 0 : i32
    %2 = arith.cmpi ne, %1, %c0_i32_0 : i32
    scf.if %2 {
      %cst_27 = arith.constant 0.000000e+00 : f32
      %31 = vector.broadcast %cst_27 : f32 to vector<2x2xf32>
      %c0_28 = arith.constant 0 : index
      %c0_29 = arith.constant 0 : index
      %32 = vector.load %arg11[%c0_28, %c0_29] : memref<2x2xf32, #tpu.memory_space<vmem>>, vector<2x2xf32>
      tpu.vector_store %arg11[%c0_28, %c0_29], %31 {strides = array<i32>} : memref<2x2xf32, #tpu.memory_space<vmem>>, vector<2x2xf32>,
    } else {
    }
    %c0 = arith.constant 0 : index
    %c0_1 = arith.constant 0 : index
    %3 = vector.load %arg3[%c0, %c0_1] : memref<4x4xf32, #tpu.memory_space<vmem>>, vector<4x4xf32>
    %c0_2 = arith.constant 0 : index
    %c0_3 = arith.constant 0 : index
    %c0_4 = arith.constant 0 : index
    %c0_5 = arith.constant 0 : index
    %4 = vector.load %arg2[%c0_2, %c0_3, %c0_4, %c0_5] : memref<1x4x4x64xf32, #tpu.memory_space<vmem>>, vector<1x1x4x64xf32>
    %5 = vector.shape_cast %4 : vector<1x1x4x64xf32> to vector<4x64xf32>
    %cst = arith.constant dense<0.000000e+00> : vector<4x64xf32>
    %6 = tpu.matmul %3, %5, %cst {dimension_numbers = #tpu.dot_dimension_numbers<[1], [0], [0], [1], [0, 0, 1, 1], [], []>} : vector<4x4xf32>, vector<4x64xf32>, vector<4x64xf32> -> vector<4x64xf32>
    %c0_6 = arith.constant 0 : index
    %c1 = arith.constant 1 : index
    %c0_7 = arith.constant 0 : index
    %c0_8 = arith.constant 0 : index
    %7 = vector.load %arg2[%c0_6, %c1, %c0_7, %c0_8] : memref<1x4x4x64xf32, #tpu.memory_space<vmem>>, vector<1x1x4x64xf32>
    %8 = vector.shape_cast %7 : vector<1x1x4x64xf32> to vector<4x64xf32>
    %cst_9 = arith.constant dense<0.000000e+00> : vector<4x64xf32>
    %9 = tpu.matmul %3, %8, %cst_9 {dimension_numbers = #tpu.dot_dimension_numbers<[1], [0], [0], [1], [0, 0, 1, 1], [], []>} : vector<4x4xf32>, vector<4x64xf32>, vector<4x64xf32> -> vector<4x64xf32>
    %10 = arith.maximumf %6, %9 : vector<4x64xf32>
    %c0_10 = arith.constant 0 : index
    %c2 = arith.constant 2 : index
    %c0_11 = arith.constant 0 : index
    %c0_12 = arith.constant 0 : index
    %11 = vector.load %arg2[%c0_10, %c2, %c0_11, %c0_12] : memref<1x4x4x64xf32, #tpu.memory_space<vmem>>, vector<1x1x4x64xf32>
    %12 = vector.shape_cast %11 : vector<1x1x4x64xf32> to vector<4x64xf32>
    %cst_13 = arith.constant dense<0.000000e+00> : vector<4x64xf32>
    %13 = tpu.matmul %3, %12, %cst_13 {dimension_numbers = #tpu.dot_dimension_numbers<[1], [0], [0], [1], [0, 0, 1, 1], [], []>} : vector<4x4xf32>, vector<4x64xf32>, vector<4x64xf32> -> vector<4x64xf32>
    %14 = arith.maximumf %10, %13 : vector<4x64xf32>
    %c0_14 = arith.constant 0 : index
    %c3 = arith.constant 3 : index
    %c0_15 = arith.constant 0 : index
    %c0_16 = arith.constant 0 : index
    %15 = vector.load %arg2[%c0_14, %c3, %c0_15, %c0_16] : memref<1x4x4x64xf32, #tpu.memory_space<vmem>>, vector<1x1x4x64xf32>
    %16 = vector.shape_cast %15 : vector<1x1x4x64xf32> to vector<4x64xf32>
    %cst_17 = arith.constant dense<0.000000e+00> : vector<4x64xf32>
    %17 = tpu.matmul %3, %16, %cst_17 {dimension_numbers = #tpu.dot_dimension_numbers<[1], [0], [0], [1], [0, 0, 1, 1], [], []>} : vector<4x4xf32>, vector<4x64xf32>, vector<4x64xf32> -> vector<4x64xf32>
    %18 = arith.maximumf %14, %17 : vector<4x64xf32>
    %c0_18 = arith.constant 0 : index
    %c0_19 = arith.constant 0 : index
    %19 = vector.load %arg4[%c0_18, %c0_19] : memref<4x1xf32, #tpu.memory_space<vmem>>, vector<4x1xf32>
    %20 = vector.broadcast %19 : vector<4x1xf32> to vector<4x64xf32>
    %21 = arith.addf %18, %20 : vector<4x64xf32>
    %22 = vector.extract_strided_slice %21 {offsets = [0, 0], sizes = [2, 64], strides = [1, 1]} : vector<4x64xf32> to vector<2x64xf32>
    %23 = vector.extract_strided_slice %21 {offsets = [2, 0], sizes = [2, 64], strides = [1, 1]} : vector<4x64xf32> to vector<2x64xf32>
    %c0_20 = arith.constant 0 : index
    %c0_21 = arith.constant 0 : index
    %24 = vector.load %arg11[%c0_20, %c0_21] : memref<2x2xf32, #tpu.memory_space<vmem>>, vector<2x2xf32>
    %cst_22 = arith.constant dense<0.000000e+00> : vector<2x2xf32>
    %25 = tpu.matmul %23, %22, %cst_22 {dimension_numbers = #tpu.dot_dimension_numbers<[1], [1], [0], [0], [0, 0, 1, 0], [], []>} : vector<2x64xf32>, vector<2x64xf32>, vector<2x2xf32> -> vector<2x2xf32>
    %26 = arith.addf %24, %25 : vector<2x2xf32>
    %c0_23 = arith.constant 0 : index
    %c0_24 = arith.constant 0 : index
    %27 = vector.load %arg11[%c0_23, %c0_24] : memref<2x2xf32, #tpu.memory_space<vmem>>, vector<2x2xf32>
    tpu.vector_store %arg11[%c0_23, %c0_24], %26 {strides = array<i32>} : memref<2x2xf32, #tpu.memory_space<vmem>>, vector<2x2xf32>,
    %c0_i32_25 = arith.constant 0 : i32
    %28 = arith.cmpi eq, %arg1, %c0_i32_25 : i32
    %29 = arith.extui %28 : i1 to i32
    %c0_i32_26 = arith.constant 0 : i32
    %30 = arith.cmpi ne, %29, %c0_i32_26 : i32
    scf.if %30 {
      %c0_27 = arith.constant 0 : index
      %c0_28 = arith.constant 0 : index
      %31 = vector.load %arg11[%c0_27, %c0_28] : memref<2x2xf32, #tpu.memory_space<vmem>>, vector<2x2xf32>
      %cst_29 = arith.constant 1.562500e-02 : f32
      %32 = vector.broadcast %cst_29 : f32 to vector<2x2xf32>
      %33 = arith.mulf %31, %32 : vector<2x2xf32>
      %c0_30 = arith.constant 0 : index
      %c0_31 = arith.constant 0 : index
      %34 = vector.load %arg5[%c0_30, %c0_31] : memref<4x2xf32, #tpu.memory_space<vmem>>, vector<4x2xf32>
      %cst_32 = arith.constant dense<0.000000e+00> : vector<4x2xf32>
      %35 = tpu.matmul %34, %33, %cst_32 {dimension_numbers = #tpu.dot_dimension_numbers<[1], [0], [0], [1], [0, 0, 1, 1], [], []>} : vector<4x2xf32>, vector<2x2xf32>, vector<4x2xf32> -> vector<4x2xf32>
      %c0_33 = arith.constant 0 : index
      %c0_34 = arith.constant 0 : index
      %36 = vector.load %arg6[%c0_33, %c0_34] : memref<2x4xf32, #tpu.memory_space<vmem>>, vector<2x4xf32>
      %cst_35 = arith.constant dense<0.000000e+00> : vector<4x4xf32>
      %37 = tpu.matmul %35, %36, %cst_35 {dimension_numbers = #tpu.dot_dimension_numbers<[1], [0], [0], [1], [0, 0, 1, 1], [], []>} : vector<4x2xf32>, vector<2x4xf32>, vector<4x4xf32> -> vector<4x4xf32>
      %c0_36 = arith.constant 0 : index
      %c0_37 = arith.constant 0 : index
      %c0_38 = arith.constant 0 : index
      %38 = vector.load %arg9[%c0_36, %c0_37, %c0_38] : memref<1x4x4xf32, #tpu.memory_space<vmem>>, vector<1x4x4xf32>
      %39 = vector.shape_cast %38 : vector<1x4x4xf32> to vector<4x4xf32>
      %40 = vector.shape_cast %37 : vector<4x4xf32> to vector<1x4x4xf32>
      tpu.vector_store %arg9[%c0_36, %c0_37, %c0_38], %40 {strides = array<i32>} : memref<1x4x4xf32, #tpu.memory_space<vmem>>, vector<1x4x4xf32>,
      %c0_39 = arith.constant 0 : index
      %c0_40 = arith.constant 0 : index
      %41 = vector.load %arg7[%c0_39, %c0_40] : memref<1x2xf32, #tpu.memory_space<vmem>>, vector<1x2xf32>
      %42 = vector.broadcast %41 : vector<1x2xf32> to vector<4x2xf32>
      %43 = arith.mulf %35, %42 : vector<4x2xf32>
      %cst_41 = arith.constant dense<0.000000e+00> : vector<4xf32>
      %44 = vector.multi_reduction <add>, %43, %cst_41 [1] : vector<4x2xf32> to vector<4xf32>
      %45 = vector.shape_cast %44 : vector<4xf32> to vector<4x1xf32>
      %c0_42 = arith.constant 0 : index
      %c0_43 = arith.constant 0 : index
      %46 = vector.load %arg8[%c0_42, %c0_43] : memref<4x1xf32, #tpu.memory_space<vmem>>, vector<4x1xf32>
      %47 = arith.addf %45, %46 : vector<4x1xf32>
      %c0_44 = arith.constant 0 : index
      %c0_45 = arith.constant 0 : index
      %c0_46 = arith.constant 0 : index
      %48 = vector.load %arg10[%c0_44, %c0_45, %c0_46] : memref<1x4x1xf32, #tpu.memory_space<vmem>>, vector<1x4x1xf32>
      %49 = vector.shape_cast %48 : vector<1x4x1xf32> to vector<4x1xf32>
      %50 = vector.shape_cast %47 : vector<4x1xf32> to vector<1x4x1xf32>
      tpu.vector_store %arg10[%c0_44, %c0_45, %c0_46], %50 {strides = array<i32>} : memref<1x4x1xf32, #tpu.memory_space<vmem>>, vector<1x4x1xf32>,
    } else {
    }
    return
  }
  func.func @transform_0(%arg0: i32, %arg1: i32) -> (i32, i32, i32, i32) {
    %c0_i32 = arith.constant 0 : i32
    %c0_i32_0 = arith.constant 0 : i32
    %c0_i32_1 = arith.constant 0 : i32
    return %arg0, %c0_i32, %c0_i32_0, %arg1 : i32, i32, i32, i32
  }
  func.func @transform_1(%arg0: i32, %arg1: i32) -> (i32, i32) {
    %c0_i32 = arith.constant 0 : i32
    %c0_i32_0 = arith.constant 0 : i32
    %c0_i32_1 = arith.constant 0 : i32
    return %c0_i32, %c0_i32_0 : i32, i32
  }
  func.func @transform_2(%arg0: i32, %arg1: i32) -> (i32, i32) {
    %c0_i32 = arith.constant 0 : i32
    %c0_i32_0 = arith.constant 0 : i32
    %c0_i32_1 = arith.constant 0 : i32
    return %c0_i32, %c0_i32_0 : i32, i32
  }
  func.func @transform_3(%arg0: i32, %arg1: i32) -> (i32, i32) {
    %c0_i32 = arith.constant 0 : i32
    %c0_i32_0 = arith.constant 0 : i32
    %c0_i32_1 = arith.constant 0 : i32
    return %c0_i32, %c0_i32_0 : i32, i32
  }
  func.func @transform_4(%arg0: i32, %arg1: i32) -> (i32, i32) {
    %c0_i32 = arith.constant 0 : i32
    %c0_i32_0 = arith.constant 0 : i32
    %c0_i32_1 = arith.constant 0 : i32
    return %c0_i32, %c0_i32_0 : i32, i32
  }
  func.func @transform_5(%arg0: i32, %arg1: i32) -> (i32, i32) {
    %c0_i32 = arith.constant 0 : i32
    %c0_i32_0 = arith.constant 0 : i32
    %c0_i32_1 = arith.constant 0 : i32
    return %c0_i32, %c0_i32_0 : i32, i32
  }
  func.func @transform_6(%arg0: i32, %arg1: i32) -> (i32, i32) {
    %c0_i32 = arith.constant 0 : i32
    %c0_i32_0 = arith.constant 0 : i32
    %c0_i32_1 = arith.constant 0 : i32
    return %c0_i32, %c0_i32_0 : i32, i32
  }
  func.func @transform_7(%arg0: i32, %arg1: i32) -> (i32, i32, i32) {
    %c0_i32 = arith.constant 0 : i32
    %c0_i32_0 = arith.constant 0 : i32
    %c0_i32_1 = arith.constant 0 : i32
    return %arg0, %c0_i32, %c0_i32_0 : i32, i32, i32
  }
  func.func @transform_8(%arg0: i32, %arg1: i32) -> (i32, i32, i32) {
    %c0_i32 = arith.constant 0 : i32
    %c0_i32_0 = arith.constant 0 : i32
    %c0_i32_1 = arith.constant 0 : i32
    return %arg0, %c0_i32, %c0_i32_0 : i32, i32, i32
  }
}

</mosaic_0001>

<bundles_post_ra>
// kernel: nonlocal_block_forward.3
= control target key start
LH: loop header
LB: loop body
LE: loop exit
PB: predicated region body
PF: predicated region fallthrough
CT: control target
= control target key end

     0   :  { %s545_s12 = smov 0   ;;  %s547_s13 = smov 0   ;;  %s584_s0 = inlined_call_operand.vmem [shape: f32[2,4,256], index: 0, kind: input, shape index: {}]   ;;  %s585_s1 = inlined_call_operand.vmem [shape: f32[2,4,4], index: 1, kind: input, shape index: {}]   ;;  %s586_s2 = inlined_call_operand.vmem [shape: f32[2,4,1], index: 2, kind: input, shape index: {}]   ;;  %s587_s3 = inlined_call_operand.vmem [shape: f32[2,4,256], index: 3, kind: output, shape index: {}]  }
   0x1   :  { %s549_s14 = smov 0  }
   0x2 LB: > { %s25_s15 = sadd.s32 1, %s517_s13  ;;  %p457_p0 = scmp.ge.s32.totalorder %s521_s14, 1  ;;  %s521_s14 = sphi %s549_s14, %s13_s14   ;;  %s517_s13 = sphi %s547_s13, %s589_s13   ;;  %s513_s12 = sphi %s545_s12, %s588_s12  }
   0x3   : > { %p27_p1 = scmp.ge.s32.totalorder %s25_s15, 2  ;;  %p176_p2 = scmp.lt.s32.totalorder %s521_s14, 3 }
   0x5   : > { %s591_s15 = smov (%p27_p1, %s25_s15), 0  ;;  %p177_p3 = pnand %p457_p0, %p176_p2 }
   0x6   : > { %p217_p4 = scmp.lt.s32.totalorder (!%p177_p3), %s513_s12, 1  ;;  %v523_v0 = vmov (!%p177_p3), 0.0   ;;  %v524_v1 = vmov (!%p177_p3), 0   ;;  %vm258_vm0 = vcmask (!%p177_p3), 1043456   ;;  %vm254_vm1 = vcmask (!%p177_p3), 31744  }
   0x7   : > { %180 = sbr.rel (%p177_p3) target bundleno = 242 (0xf2), region = 32  ;;  %327 = vmatprep.mubr.f32.mxu0 (!%p177_p3), %v523_v0  ;;  %497 = vset.pattern.permute.xlu0 (!%p177_p3), %v524_v1 }
   0xe   : > { %s593_s12 = smov (!%p217_p4, %s513_s12), 1 }
   0xf   : > { %s469_s16 = sshll.u32 %s593_s12, 3  ;;  %s460_s17 = sshll.u32 %s593_s12, 2 }
  0x10   : > { %s224_s20 = scalar_lea.vmem %s584_s0, %s469_s16  ;;  %s229_s23 = scalar_lea.vmem %s585_s1, %s460_s17 }
  0x11   : > { %v244_v2 = vld [vmem:[%s224_s20] sm:$0xff]  ;;  %s233_s26 = scalar_lea.vmem %s586_s2, %s460_s17  ;;  %s242_s29 = scalar_lea.vmem %s587_s3, %s469_s16 }
  0x12   : > { %v253_v3 = vcombine.high %v244_v2, %v244_v2  ;;  %v246_v4 = vld [vmem:[%s233_s26] sm:$0xf] }
  0x13   : > { %v245_v5 = vld [vmem:[%s229_s23] sm:$0xf]  ;;  %249 = vperm.xlu0 %497, %v246_v4  }
  0x14   : > { %464 = vmatprep.subr.msk.mxu0 %vm258_vm0, %v253_v3 }
  0x15   : > { %465 = vmatpush1.msk.msra.mxu0 %vm258_vm0, %v244_v2 }
  0x16   : > { %466 = vmatmul.mubr.msk.f32.vlgmr.msra.gmra.mrb[0].mxu0 %vm254_vm1, %v245_v5 }
  0x92   : > { %v250_v6 = vpop.permute.xlu0 %249 }
  0xe9   : > { %v329_v7 = vpop.f32.mrb[0].mxu0 }
  0xea   : > { %v330_v8 = vadd.f32 %v329_v7, %v250_v6  ;;  %v331_v9 = vpop.f32.mrb[1].mxu0 }
  0xeb   : > { %v332_v10 = vadd.f32 %v331_v9, %v250_v6 }
  0xec   : > { %v335_v11 = vadd.f32 %v330_v8, %v244_v2 }
  0xed   : > { %v336_v12 = vadd.f32 %v332_v10, %v253_v3 }
  0xef   : > { %v339_v13 = vcombine.low %v335_v11, %v336_v12 }
  0xf1   : > { %341 = vst [vmem:[%s242_s29] sm:$0xff] %v339_v13 }
  0xf2 PF: > { %s13_s14 = sadd.s32 1, %s521_s14   ;;  %s588_s12 = smov %s517_s13 }
  0xf3   : > { %p10_p5 = scmp.ge.s32.totalorder %s13_s14, 4   ;;  %s589_s13 = smov %s591_s15 }
  0xf5   :  { %12 = sbr.rel (!%p10_p5) target bundleno = 2 (0x2), region = 68 }

// kernel: nonlocal_block_forward.2
= control target key start
LH: loop header
LB: loop body
LE: loop exit
PB: predicated region body
PF: predicated region fallthrough
CT: control target
= control target key end

     0   :  { %s1196_s27 = smov 0   ;;  %s1198_s28 = smov 0   ;;  %s1271_s0 = inlined_call_operand.vmem [shape: f32[2,4,4,64], index: 0, kind: input, shape index: {}]   ;;  %s1272_s1 = inlined_call_operand.vmem [shape: f32[4,4], index: 1, kind: input, shape index: {}]   ;;  %s1273_s2 = inlined_call_operand.vmem [shape: f32[4,1], index: 2, kind: input, shape index: {}]   ;;  %s1274_s3 = inlined_call_operand.vmem [shape: f32[4,2], index: 3, kind: input, shape index: {}]   ;;  %s1275_s4 = inlined_call_operand.vmem [shape: f32[2,4], index: 4, kind: input, shape index: {}]   ;;  %s1276_s5 = inlined_call_operand.vmem [shape: f32[1,2], index: 5, kind: input, shape index: {}]   ;;  %s1277_s6 = inlined_call_operand.vmem [shape: f32[4,1], index: 6, kind: input, shape index: {}]   ;;  %s1278_s7 = inlined_call_operand.vmem [shape: f32[2,4,4], index: 7, kind: output, shape index: {0}]   ;;  %s1279_s8 = inlined_call_operand.vmem [shape: f32[2,4,1], index: 8, kind: output, shape index: {1}]  }
   0x1   :  { %s1200_s29 = smov 0  }
   0x2 LB: > { %s31_s30 = sadd.s32 1, %s1142_s28  ;;  %p1021_p0 = scmp.ge.s32.totalorder %s1146_s29, 1  ;;  %s1146_s29 = sphi %s1200_s29, %s19_s29   ;;  %s1142_s28 = sphi %s1198_s28, %s1281_s28   ;;  %s1138_s27 = sphi %s1196_s27, %s1280_s27  }
   0x3   : > { %p33_p1 = scmp.ge.s32.totalorder %s31_s30, 2  ;;  %p282_p2 = scmp.lt.s32.totalorder %s1146_s29, 3 }
   0x5   : > { %s1283_s30 = smov (%p33_p1, %s31_s30), 0  ;;  %p283_p3 = pnand %p1021_p0, %p282_p2 }
   0x6   : > { %p322_p4 = scmp.lt.s32.totalorder (!%p283_p3), %s1138_s27, 1  ;;  %v1148_v0 = vmov (!%p283_p3), 0.0   ;;  %v652_v1 = vld [vmem:[%s1273_s2] sm:$0xf] (!%p283_p3)  ;;  %vm1149_vm0 = vmmov (!%p283_p3), 0   ;;  %v1150_v2 = vmov (!%p283_p3), 0  }
   0x7   : > { %286 = sbr.rel (%p283_p3) target bundleno = 894 (0x37e), region = 48  ;;  %1061 = vmatprep.subr.mxu0 (!%p283_p3), %v1148_v0  ;;  %1066 = vmatprep.subr.mxu1 (!%p283_p3), %v1148_v0  ;;  %vm350_vm1 = vcmask (!%p283_p3), 1043456   ;;  %v344_v3 = vld [vmem:[%s1272_s1] sm:$0xf] (!%p283_p3)  ;;  %vm346_vm2 = vcmask (!%p283_p3), 31744   ;;  %vm342_vm3 = vcmask (!%p283_p3), 9216  }
   0x8   : > { %1063 = vmatprep.mubr.msk.f32.mxu0 (!%p283_p3), %vm1149_vm0, %v1148_v0  ;;  %1068 = vmatprep.mubr.msk.f32.mxu1 (!%p283_p3), %vm1149_vm0, %v1148_v0  ;;  %343 = vst.msk [vmem:[#allocation2] sm:$0x3] (!%p283_p3), %vm342_vm3, %v1148_v0  ;;  %vm662_vm4 = vcmask (!%p283_p3), 523264   ;;  %vm750_vm5 = vcmask (!%p283_p3), 1041408   ;;  %v824_v22 = vld [vmem:[%s1275_s4] sm:$0x3] (!%p283_p3) }
   0x9   : > { %1123 = vset.pattern.permute.xlu0 (!%p283_p3), %v1150_v2  ;;  %v745_v29 = vld [vmem:[%s1274_s3] sm:$0xf] (!%p283_p3)  ;;  %vm746_vm6 = vcmask (!%p283_p3), 15360   ;;  %vm911_vm7 = vcmask (!%p283_p3), 11264   ;;  %vm917_vm8 = vcmask (!%p283_p3), 3072   ;;  %vm901_vm9 = vcmask (!%p283_p3), 27648  }
   0xa   : > { %655 = vperm.xlu0 (!%p283_p3), %1123, %v652_v1   ;;  %v1043_v30 = vld [vmem:[%s1276_s5] ss:$0 sm:$0xff] (!%p283_p3) }
   0xb   : > { %v915_v35 = vld [vmem:[%s1277_s6] sm:$0xf] (!%p283_p3) }
   0xe   : > { %s1285_s27 = smov (!%p322_p4, %s1138_s27), 1 }
   0xf   : > { %s1046_s11 = sshll.u32 %s1285_s27, 4  ;;  %v659_v23 = vld [vmem:[#allocation2] sm:$0x3]  ;;  %s1024_s23 = sshll.u32 %s1285_s27, 2 }
  0x10   : > { %s329_s14 = scalar_lea.vmem %s1271_s0, %s1046_s11  ;;  %s337_s10 = scalar_lea.vmem %s1279_s8, %s1024_s23 }
  0x11   : > { %v345_v4 = vld [vmem:[%s329_s14] sm:$0xf]  ;;  %v1028_v5 = vld [vmem:[%s329_s14 + $0x4] sm:$0xf]  ;;  %v1031_v6 = vld [vmem:[%s329_s14 + $0x8] sm:$0xf]  ;;  %s333_s13 = scalar_lea.vmem %s1278_s7, %s1024_s23 }
  0x12   : > { %1062 = vmatpush3.msk.msra.mxu0 %vm350_vm1, %v345_v4  ;;  %1067 = vmatpush3.msk.msra.mxu1 %vm350_vm1, %v1028_v5  ;;  %v1034_v7 = vld [vmem:[%s329_s14 + $0xc] sm:$0xf] }
  0x13   : > { %1064 = vmatmul.mubr.msk.f32.vlgmr.msra.gmra.mrb[0].mxu0 %vm346_vm2, %v344_v3  ;;  %1069 = vmatmul.mubr.msk.f32.vlgmr.msra.gmra.mrb[0].mxu1 %vm346_vm2, %v344_v3 }
  0x14   : > { %1071 = vmatprep.subr.mxu0 %v1148_v0  ;;  %1073 = vmatprep.mubr.msk.f32.mxu0 %vm1149_vm0, %v1148_v0 }
  0x15   : > { %1072 = vmatpush3.msk.msra.mxu0 %vm350_vm1, %v1031_v6  ;;  %1076 = vmatprep.subr.mxu1 %v1148_v0 }
  0x16   : > { %1077 = vmatpush3.msk.msra.mxu1 %vm350_vm1, %v1034_v7  ;;  %1078 = vmatprep.mubr.msk.f32.mxu1 %vm1149_vm0, %v1148_v0 }
  0x17   : > { %1074 = vmatmul.mubr.msk.f32.vlgmr.msra.gmra.mrb[2].mxu0 %vm346_vm2, %v344_v3  ;;  %1079 = vmatmul.mubr.msk.f32.vlgmr.msra.gmra.mrb[2].mxu1 %vm346_vm2, %v344_v3 }
  0x18   : > { %1081 = vmatprep.subr.mxu0 %v1148_v0  ;;  %1083 = vmatprep.mubr.msk.f32.mxu0 %vm1149_vm0, %v1148_v0 }
  0x19   : > { %1086 = vmatprep.subr.mxu1 %v1148_v0  ;;  %1088 = vmatprep.mubr.msk.f32.mxu1 %vm1149_vm0, %v1148_v0 }
  0x89   : > { %v656_v18 = vpop.permute.xlu0 %655 }
  0xe6   : > { %v420_v8 = vpop.f32.mrb[0].mxu0  ;;  %v495_v9 = vpop.f32.mrb[0].mxu1 }
  0xe7   : > { %v499_v10 = vmax.f32 %v420_v8, %v495_v9  ;;  %v1065_v11 = vpop.f32.mrb[1].mxu0  ;;  %v1070_v12 = vpop.f32.mrb[1].mxu1 }
  0xea   : > { %v571_v13 = vpop.f32.mrb[2].mxu0  ;;  %v647_v14 = vpop.f32.mrb[2].mxu1 }
  0xeb   : > { %v575_v15 = vmax.f32 %v499_v10, %v571_v13  ;;  %v1075_v16 = vpop.f32.mrb[3].mxu0  ;;  %v1080_v17 = vpop.f32.mrb[3].mxu1 }
  0xed   : > { %v651_v19 = vmax.f32 %v575_v15, %v647_v14 }
  0xef   : > { %v658_v20 = vadd.f32 %v656_v18, %v651_v19 }
  0xf1   : > { %v661_v21 = vrot.slane %v658_v20, 2  ;;  %1082 = vmatpush3.xpose.msk.msra.mxu0 %vm662_vm4, %v658_v20 }
  0xf2   : > { %1091 = vmatprep.subr.mxu0 %v1148_v0 }
  0xf4   : > { %1084 = vmatmul.mubr.msk.f32.vlgmr.msra.gmra.mrb[4].mxu0 %vm662_vm4, %v661_v21 }
  0xf5   : > { %1093 = vmatprep.mubr.msk.f32.mxu0 %vm1149_vm0, %v1148_v0  ;;  %1092 = vmatpush3.msk.msra.mxu0 %vm750_vm5, %v824_v22 }
 0x1c7   : > { %v733_v24 = vpop.f32.mrb[4].mxu0 }
 0x1c8   : > { %v737_v25 = vadd.f32 %v733_v24, %v659_v23  ;;  %v1085_v26 = vpop.f32.mrb[5].mxu0 }
 0x1ca   : > { %739 = vst.msk [vmem:[#allocation2] sm:$0x3] %vm342_vm3, %v737_v25 }
 0x1d1   : > { %v743_v27 = vld [vmem:[#allocation2] sm:$0x3] }
 0x1d2   : > { %v744_v28 = vmul.f32 0.015625, %v743_v27 }
 0x1d4   : > { %1087 = vmatpush3.msk.msra.mxu1 %vm750_vm5, %v744_v28 }
 0x1d5   : > { %1089 = vmatmul.mubr.msk.f32.vlgmr.msra.gmra.mrb[4].mxu1 %vm746_vm6, %v745_v29 }
 0x2a8   : > { %v820_v31 = vpop.f32.mrb[4].mxu1 }
 0x2a9   : > { %v910_v32 = vmul.f32 %v1043_v30, %v820_v31  ;;  %v1090_v33 = vpop.f32.mrb[5].mxu1  ;;  %1094 = vmatmul.mubr.msk.f32.vlgmr.msra.gmra.mrb[6].mxu0 %vm746_vm6, %v820_v31 }
 0x2ab   : > { %v912_v34 = vsel %vm911_vm7, %v910_v32, 0.0 }
 0x2ac   : > { %913 = vadd.xlane.f32.xlu0 %v912_v34 }
 0x339   : > { %v914_v36 = vpop.xlane.xlu0 %913 }
 0x33a   : > { %v916_v37 = vadd.f32 %v915_v35, %v914_v36 }
 0x33c   : > { %918 = vst.msk [vmem:[%s337_s10] sm:$0xf] %vm917_vm8, %v916_v37 }
 0x37c   : > { %v897_v38 = vpop.f32.mrb[6].mxu0 }
 0x37d   : > { %902 = vst.msk [vmem:[%s333_s13] sm:$0xf] %vm901_vm9, %v897_v38  ;;  %v1095_v39 = vpop.f32.mrb[7].mxu0 }
 0x37e PF: > { %s19_s29 = sadd.s32 1, %s1146_s29   ;;  %s1280_s27 = smov %s1142_s28 }
 0x37f   : > { %p16_p5 = scmp.ge.s32.totalorder %s19_s29, 4   ;;  %s1281_s28 = smov %s1283_s30 }
 0x381   :  { %18 = sbr.rel (!%p16_p5) target bundleno = 2 (0x2), region = 101 }

</bundles_post_ra>
